<compile_context>
chip_gen: v7x
topology: tpu7x:2x2x1
jax: 0.10.0
libtpu: 0.0.40
codegen_flags: <defaults>
</compile_context>

<pallas_src>
import functools

import jax
import jax.numpy as jnp
from jax.experimental import pallas as pl
from jax.experimental.pallas import tpu as pltpu  # noqa: F401  (kept for TPU-specific tuning hooks)


# ----------------------------------------------------------------------------
# Fully fused REN forward kernel (single invocation, no grid).
# ----------------------------------------------------------------------------
def ren_kernel(story_ref,    # [T*B, S, E]  embedded story, T-major flattening
               mask_s_ref,   # [S, E]       story InputEncoder mask
               qemb_ref,     # [B, Q, E]    embedded query
               mask_q_ref,   # [Q, E]       query InputEncoder mask
               keys_ref,     # [nb, E]      entity keys
               Ut_ref,       # [E, E]       U.weight.T
               Vt_ref,       # [E, E]       V.weight.T
               Wt_ref,       # [E, E]       W.weight.T
               Ht_ref,       # [E, E]       H.weight.T
               Rt_ref,       # [E, Vpad]    R.weight.T, zero-padded to 128 lanes
               bias_ref,     # [1, E]
               pw_ref,       # [1, E]       PReLU per-channel weight
               y_ref):       # [B, Vpad]
    TB, S, E = story_ref.shape
    B = qemb_ref.shape[0]
    nb = keys_ref.shape[0]
    T = TB // B

    pw = pw_ref[...]                                            # [1, E]
    bias = bias_ref[...]                                        # [1, E]

    # ---- prologue: loop-invariant work hoisted out of the recurrence -------
    # InputEncoder for all T sentences at once: x[t,b,:] = sum_s story*mask.
    x_all = jnp.sum(story_ref[...] * mask_s_ref[...][None, :, :], axis=1)   # [T*B, E]
    # W @ x for all sentences in one GEMM (M = T*B instead of T GEMMs of M=B).
    xw_all = jnp.dot(x_all, Wt_ref[...], preferred_element_type=jnp.float32)

    keys = keys_ref[...]                                        # [nb, E]
    key_V = jnp.dot(keys, Vt_ref[...],
                    preferred_element_type=jnp.float32)         # [nb, E]

    # Flat [B*nb, E] layout (b-major): full 8 sublanes for elementwise work.
    keys_flat = jnp.broadcast_to(keys[None, :, :], (B, nb, E)).reshape(B * nb, E)
    const_term = (jnp.broadcast_to(key_V[None, :, :], (B, nb, E))
                  .reshape(B * nb, E) + bias)                   # V key_j + bias

    # zero_state: every memory block starts at its key vector.
    state = keys_flat                                           # [B*nb, E]

    # ---- MemCell recurrence over sentences ----------------------------------
    # T is small & static -> fully unrolled (equivalent to
    # lax.fori_loop(..., unroll=True)); state stays in registers throughout.
    for t in range(T):
        x_t = x_all[t * B:(t + 1) * B]                          # [B, E]
        xw_t = xw_all[t * B:(t + 1) * B]                        # [B, E]
        x_flat = jnp.broadcast_to(x_t[:, None, :], (B, nb, E)).reshape(B * nb, E)
        xw_flat = jnp.broadcast_to(xw_t[:, None, :], (B, nb, E)).reshape(B * nb, E)

        # gate_j = sigmoid(<x, state_j> + <x, key_j>)  -- fused single reduce.
        gate = jax.nn.sigmoid(
            jnp.sum(x_flat * (state + keys_flat), axis=-1, keepdims=True))

        # candidate_j = PReLU(U state_j + bias + W x + V key_j)
        state_U = jnp.dot(state, Ut_ref[...],
                          preferred_element_type=jnp.float32)   # [B*nb, E]
        pre = state_U + const_term + xw_flat
        cand = jnp.where(pre >= 0, pre, pw * pre)

        # state update, Threshold(0 -> 1), divide by pre-threshold L2 norm
        # (matches the reference: norm of s_next, division of threshold(s_next)).
        s_next = state + gate * cand
        sumsq = jnp.sum(s_next * s_next, axis=-1, keepdims=True)
        inv_norm = pl.reciprocal(jnp.sqrt(sumsq) + 1e-8, approx=True)   # EUP
        state = jnp.where(s_next > 0, s_next, 1.0) * inv_norm

    # ---- OutputModule (fused: no HBM round trip of the entity state) --------
    xq = jnp.sum(qemb_ref[...] * mask_q_ref[...][None, :, :], axis=1)   # [B, E]
    state3 = state.reshape(B, nb, E)

    att = jnp.sum(state3 * xq[:, None, :], axis=-1)             # [B, nb]
    att = jax.nn.softmax(att, axis=-1)      # max-subtraction folded into softmax
    u = jnp.sum(state3 * att[:, :, None], axis=1)               # [B, E]

    h = jnp.dot(u, Ht_ref[...], preferred_element_type=jnp.float32)
    pre = xq + h
    act = jnp.where(pre >= 0, pre, pw * pre)                    # PReLU
    y_ref[...] = jnp.dot(act, Rt_ref[...],
                         preferred_element_type=jnp.float32)    # lane-dense store


# ----------------------------------------------------------------------------
# Parameters (mirrors the PyTorch module's init).
# ----------------------------------------------------------------------------
def make_ren_params(key, vocab_size, num_blocks, embed_size,
                    sentence_size, query_size):
    total_vocab = vocab_size + num_blocks
    ks = jax.random.split(key, 6)
    params = {
        # TODO(synk): padding_idx=0 zeroing is overwritten by .normal_() in the
        # reference __init__, so the full table is normal-initialised here too.
        "embed": 0.1 * jax.random.normal(ks[0], (total_vocab, embed_size),
                                         jnp.float32),
        "mask_story": jnp.ones((sentence_size, embed_size), jnp.float32),
        "mask_query": jnp.ones((query_size, embed_size), jnp.float32),
        "U": 0.1 * jax.random.normal(ks[1], (embed_size, embed_size), jnp.float32),
        "V": 0.1 * jax.random.normal(ks[2], (embed_size, embed_size), jnp.float32),
        "W": 0.1 * jax.random.normal(ks[3], (embed_size, embed_size), jnp.float32),
        "bias": 0.1 * jax.random.normal(ks[4], (embed_size,), jnp.float32),
        "prelu_w": jnp.ones((embed_size,), jnp.float32),   # init=1.0
        "H": 0.1 * jax.random.normal(ks[5], (embed_size, embed_size), jnp.float32),
        "R": 0.1 * jax.random.normal(jax.random.fold_in(key, 7),
                                     (total_vocab, embed_size), jnp.float32),
    }
    return params


# ----------------------------------------------------------------------------
# Wrapper: embedding gathers / layout plumbing in plain JAX, forward in Pallas.
# ----------------------------------------------------------------------------
@functools.partial(jax.jit, static_argnames=("num_blocks",))
def ren_forward(params, story, query, *, num_blocks):
    embed = params["embed"]
    total_vocab, E = embed.shape
    B, T, S = story.shape
    Q = query.shape[1]
    nb = num_blocks

    # Embedding gathers (glue, plain JAX).
    story_emb = embed[story]                              # [B, T, S, E]
    # T-major flattening so sentence t is the contiguous row block [t*B,(t+1)*B).
    story_emb = jnp.transpose(story_emb, (1, 0, 2, 3)).reshape(T * B, S, E)
    query_emb = embed[query]                              # [B, Q, E]
    keys = embed[total_vocab - nb:]                       # [nb, E]

    # nn.Linear computes x @ W.T; pass transposed weights.
    Ut, Vt, Wt, Ht = params["U"].T, params["V"].T, params["W"].T, params["H"].T
    # Pad the readout matrix's vocab dim to a multiple of 128 -> lane-dense
    # output store; the padding is sliced off below.
    vpad = ((total_vocab + 127) // 128) * 128
    Rt = jnp.zeros((E, vpad), jnp.float32).at[:, :total_vocab].set(params["R"].T)
    bias2d = params["bias"][None, :]                      # [1, E]
    pw2d = params["prelu_w"][None, :]                     # [1, E]

    y_pad = pl.pallas_call(
        ren_kernel,
        out_shape=jax.ShapeDtypeStruct((B, vpad), jnp.float32),
    )(story_emb, params["mask_story"], query_emb, params["mask_query"],
      keys, Ut, Vt, Wt, Ht, Rt, bias2d, pw2d)
    return y_pad[:, :total_vocab]


if __name__ == "__main__":
    # Small shapes consistent with the module.
    B = 2              # batch
    T = 3              # number of story sentences
    S = 8              # sentence_size
    Q = 8              # query_size
    E = 32             # embed_size
    NB = 4             # num_blocks
    VOCAB = 20         # vocab_size (before +num_blocks)

    key = jax.random.PRNGKey(0)
    pkey, skey, qkey = jax.random.split(key, 3)
    params = make_ren_params(pkey, VOCAB, NB, E, S, Q)

    story = jax.random.randint(skey, (B, T, S), 0, VOCAB + NB, dtype=jnp.int32)
    query = jax.random.randint(qkey, (B, Q), 0, VOCAB + NB, dtype=jnp.int32)

    y = ren_forward(params, story, query, num_blocks=NB)
    y = jax.block_until_ready(y)

    assert y.shape == (B, VOCAB + NB), y.shape
    assert bool(jnp.all(jnp.isfinite(y)))
    print("KERNEL_OK")
</pallas_src>

<mosaic_0001>
module attributes {stable_mosaic.version = 11 : i64} {
  func.func @ren_kernel(%arg0: memref<6x8x32xf32, #tpu.memory_space<vmem>>, %arg1: memref<8x32xf32, #tpu.memory_space<vmem>>, %arg2: memref<2x8x32xf32, #tpu.memory_space<vmem>>, %arg3: memref<8x32xf32, #tpu.memory_space<vmem>>, %arg4: memref<4x32xf32, #tpu.memory_space<vmem>>, %arg5: memref<32x32xf32, #tpu.memory_space<vmem>>, %arg6: memref<32x32xf32, #tpu.memory_space<vmem>>, %arg7: memref<32x32xf32, #tpu.memory_space<vmem>>, %arg8: memref<32x32xf32, #tpu.memory_space<vmem>>, %arg9: memref<32x128xf32, #tpu.memory_space<vmem>>, %arg10: memref<1x32xf32, #tpu.memory_space<vmem>>, %arg11: memref<1x32xf32, #tpu.memory_space<vmem>>, %arg12: memref<2x128xf32, #tpu.memory_space<vmem>>) attributes {dimension_semantics = [], scalar_prefetch = 0 : i64, scratch_operands = 0 : i64, tpu.core_type = #tpu.core_type<tc>} {
    %c0 = arith.constant 0 : index
    %c0_0 = arith.constant 0 : index
    %0 = vector.load %arg11[%c0, %c0_0] : memref<1x32xf32, #tpu.memory_space<vmem>>, vector<1x32xf32>
    %c0_1 = arith.constant 0 : index
    %c0_2 = arith.constant 0 : index
    %1 = vector.load %arg10[%c0_1, %c0_2] : memref<1x32xf32, #tpu.memory_space<vmem>>, vector<1x32xf32>
    %c0_3 = arith.constant 0 : index
    %c0_4 = arith.constant 0 : index
    %c0_5 = arith.constant 0 : index
    %2 = vector.load %arg0[%c0_3, %c0_4, %c0_5] : memref<6x8x32xf32, #tpu.memory_space<vmem>>, vector<6x8x32xf32>
    %c0_6 = arith.constant 0 : index
    %c0_7 = arith.constant 0 : index
    %3 = vector.load %arg1[%c0_6, %c0_7] : memref<8x32xf32, #tpu.memory_space<vmem>>, vector<8x32xf32>
    %4 = vector.shape_cast %3 : vector<8x32xf32> to vector<1x8x32xf32>
    %5 = vector.broadcast %4 : vector<1x8x32xf32> to vector<6x8x32xf32>
    %6 = arith.mulf %2, %5 : vector<6x8x32xf32>
    %cst = arith.constant dense<0.000000e+00> : vector<6x32xf32>
    %7 = vector.multi_reduction <add>, %6, %cst [1] : vector<6x8x32xf32> to vector<6x32xf32>
    %c0_8 = arith.constant 0 : index
    %c0_9 = arith.constant 0 : index
    %8 = vector.load %arg7[%c0_8, %c0_9] : memref<32x32xf32, #tpu.memory_space<vmem>>, vector<32x32xf32>
    %cst_10 = arith.constant dense<0.000000e+00> : vector<6x32xf32>
    %9 = tpu.matmul %7, %8, %cst_10 {dimension_numbers = #tpu.dot_dimension_numbers<[1], [0], [0], [1], [0, 0, 1, 1], [], []>} : vector<6x32xf32>, vector<32x32xf32>, vector<6x32xf32> -> vector<6x32xf32>
    %c0_11 = arith.constant 0 : index
    %c0_12 = arith.constant 0 : index
    %10 = vector.load %arg4[%c0_11, %c0_12] : memref<4x32xf32, #tpu.memory_space<vmem>>, vector<4x32xf32>
    %c0_13 = arith.constant 0 : index
    %c0_14 = arith.constant 0 : index
    %11 = vector.load %arg6[%c0_13, %c0_14] : memref<32x32xf32, #tpu.memory_space<vmem>>, vector<32x32xf32>
    %cst_15 = arith.constant dense<0.000000e+00> : vector<4x32xf32>
    %12 = tpu.matmul %10, %11, %cst_15 {dimension_numbers = #tpu.dot_dimension_numbers<[1], [0], [0], [1], [0, 0, 1, 1], [], []>} : vector<4x32xf32>, vector<32x32xf32>, vector<4x32xf32> -> vector<4x32xf32>
    %13 = vector.shape_cast %10 : vector<4x32xf32> to vector<1x4x32xf32>
    %14 = vector.shape_cast %13 : vector<1x4x32xf32> to vector<1x4x32xf32>
    %15 = vector.broadcast %14 : vector<1x4x32xf32> to vector<2x4x32xf32>
    %16 = vector.shape_cast %15 : vector<2x4x32xf32> to vector<8x32xf32>
    %17 = vector.shape_cast %12 : vector<4x32xf32> to vector<1x4x32xf32>
    %18 = vector.shape_cast %17 : vector<1x4x32xf32> to vector<1x4x32xf32>
    %19 = vector.broadcast %18 : vector<1x4x32xf32> to vector<2x4x32xf32>
    %20 = vector.shape_cast %19 : vector<2x4x32xf32> to vector<8x32xf32>
    %21 = vector.broadcast %1 : vector<1x32xf32> to vector<8x32xf32>
    %22 = arith.addf %20, %21 : vector<8x32xf32>
    %23 = vector.extract_strided_slice %7 {offsets = [0, 0], sizes = [2, 32], strides = [1, 1]} : vector<6x32xf32> to vector<2x32xf32>
    %24 = vector.extract_strided_slice %9 {offsets = [0, 0], sizes = [2, 32], strides = [1, 1]} : vector<6x32xf32> to vector<2x32xf32>
    %25 = vector.shape_cast %23 : vector<2x32xf32> to vector<2x1x32xf32>
    %26 = vector.shape_cast %25 : vector<2x1x32xf32> to vector<2x1x32xf32>
    %27 = vector.broadcast %26 : vector<2x1x32xf32> to vector<2x4x32xf32>
    %28 = vector.shape_cast %27 : vector<2x4x32xf32> to vector<8x32xf32>
    %29 = vector.shape_cast %24 : vector<2x32xf32> to vector<2x1x32xf32>
    %30 = vector.shape_cast %29 : vector<2x1x32xf32> to vector<2x1x32xf32>
    %31 = vector.broadcast %30 : vector<2x1x32xf32> to vector<2x4x32xf32>
    %32 = vector.shape_cast %31 : vector<2x4x32xf32> to vector<8x32xf32>
    %33 = arith.addf %16, %16 : vector<8x32xf32>
    %34 = arith.mulf %28, %33 : vector<8x32xf32>
    %cst_16 = arith.constant dense<0.000000e+00> : vector<8xf32>
    %35 = vector.multi_reduction <add>, %34, %cst_16 [1] : vector<8x32xf32> to vector<8xf32>
    %36 = vector.shape_cast %35 : vector<8xf32> to vector<8x1xf32>
    %37 = arith.negf %36 : vector<8x1xf32>
    %38 = math.exp %37 : vector<8x1xf32>
    %cst_17 = arith.constant 1.000000e+00 : f32
    %39 = vector.broadcast %cst_17 : f32 to vector<8x1xf32>
    %40 = arith.addf %39, %38 : vector<8x1xf32>
    %41 = arith.divf %39, %40 : vector<8x1xf32>
    %c0_18 = arith.constant 0 : index
    %c0_19 = arith.constant 0 : index
    %42 = vector.load %arg5[%c0_18, %c0_19] : memref<32x32xf32, #tpu.memory_space<vmem>>, vector<32x32xf32>
    %cst_20 = arith.constant dense<0.000000e+00> : vector<8x32xf32>
    %43 = tpu.matmul %16, %42, %cst_20 {dimension_numbers = #tpu.dot_dimension_numbers<[1], [0], [0], [1], [0, 0, 1, 1], [], []>} : vector<8x32xf32>, vector<32x32xf32>, vector<8x32xf32> -> vector<8x32xf32>
    %44 = arith.addf %43, %22 : vector<8x32xf32>
    %45 = arith.addf %44, %32 : vector<8x32xf32>
    %cst_21 = arith.constant 0.000000e+00 : f32
    %46 = vector.broadcast %cst_21 : f32 to vector<8x32xf32>
    %47 = arith.cmpf oge, %45, %46 : vector<8x32xf32>
    %48 = vector.broadcast %0 : vector<1x32xf32> to vector<8x32xf32>
    %49 = arith.mulf %48, %45 : vector<8x32xf32>
    %50 = arith.select %47, %45, %49 : vector<8x32xi1>, vector<8x32xf32>
    %51 = vector.broadcast %41 : vector<8x1xf32> to vector<8x32xf32>
    %52 = arith.mulf %51, %50 : vector<8x32xf32>
    %53 = arith.addf %16, %52 : vector<8x32xf32>
    %54 = arith.mulf %53, %53 : vector<8x32xf32>
    %cst_22 = arith.constant dense<0.000000e+00> : vector<8xf32>
    %55 = vector.multi_reduction <add>, %54, %cst_22 [1] : vector<8x32xf32> to vector<8xf32>
    %56 = vector.shape_cast %55 : vector<8xf32> to vector<8x1xf32>
    %57 = math.sqrt %56 : vector<8x1xf32>
    %cst_23 = arith.constant 9.99999993E-9 : f32
    %58 = vector.broadcast %cst_23 : f32 to vector<8x1xf32>
    %59 = arith.addf %57, %58 : vector<8x1xf32>
    %60 = tpu.reciprocal %59 {approx = true} : vector<8x1xf32> -> vector<8x1xf32>
    %cst_24 = arith.constant 0.000000e+00 : f32
    %61 = vector.broadcast %cst_24 : f32 to vector<8x32xf32>
    %62 = arith.cmpf ogt, %53, %61 : vector<8x32xf32>
    %cst_25 = arith.constant 1.000000e+00 : f32
    %63 = vector.broadcast %cst_25 : f32 to vector<8x32xf32>
    %64 = arith.select %62, %53, %63 : vector<8x32xi1>, vector<8x32xf32>
    %65 = vector.broadcast %60 : vector<8x1xf32> to vector<8x32xf32>
    %66 = arith.mulf %64, %65 : vector<8x32xf32>
    %67 = vector.extract_strided_slice %7 {offsets = [2, 0], sizes = [2, 32], strides = [1, 1]} : vector<6x32xf32> to vector<2x32xf32>
    %68 = vector.extract_strided_slice %9 {offsets = [2, 0], sizes = [2, 32], strides = [1, 1]} : vector<6x32xf32> to vector<2x32xf32>
    %69 = vector.shape_cast %67 : vector<2x32xf32> to vector<2x1x32xf32>
    %70 = vector.shape_cast %69 : vector<2x1x32xf32> to vector<2x1x32xf32>
    %71 = vector.broadcast %70 : vector<2x1x32xf32> to vector<2x4x32xf32>
    %72 = vector.shape_cast %71 : vector<2x4x32xf32> to vector<8x32xf32>
    %73 = vector.shape_cast %68 : vector<2x32xf32> to vector<2x1x32xf32>
    %74 = vector.shape_cast %73 : vector<2x1x32xf32> to vector<2x1x32xf32>
    %75 = vector.broadcast %74 : vector<2x1x32xf32> to vector<2x4x32xf32>
    %76 = vector.shape_cast %75 : vector<2x4x32xf32> to vector<8x32xf32>
    %77 = arith.addf %66, %16 : vector<8x32xf32>
    %78 = arith.mulf %72, %77 : vector<8x32xf32>
    %cst_26 = arith.constant dense<0.000000e+00> : vector<8xf32>
    %79 = vector.multi_reduction <add>, %78, %cst_26 [1] : vector<8x32xf32> to vector<8xf32>
    %80 = vector.shape_cast %79 : vector<8xf32> to vector<8x1xf32>
    %81 = arith.negf %80 : vector<8x1xf32>
    %82 = math.exp %81 : vector<8x1xf32>
    %cst_27 = arith.constant 1.000000e+00 : f32
    %83 = vector.broadcast %cst_27 : f32 to vector<8x1xf32>
    %84 = arith.addf %83, %82 : vector<8x1xf32>
    %85 = arith.divf %83, %84 : vector<8x1xf32>
    %c0_28 = arith.constant 0 : index
    %c0_29 = arith.constant 0 : index
    %86 = vector.load %arg5[%c0_28, %c0_29] : memref<32x32xf32, #tpu.memory_space<vmem>>, vector<32x32xf32>
    %cst_30 = arith.constant dense<0.000000e+00> : vector<8x32xf32>
    %87 = tpu.matmul %66, %86, %cst_30 {dimension_numbers = #tpu.dot_dimension_numbers<[1], [0], [0], [1], [0, 0, 1, 1], [], []>} : vector<8x32xf32>, vector<32x32xf32>, vector<8x32xf32> -> vector<8x32xf32>
    %88 = arith.addf %87, %22 : vector<8x32xf32>
    %89 = arith.addf %88, %76 : vector<8x32xf32>
    %cst_31 = arith.constant 0.000000e+00 : f32
    %90 = vector.broadcast %cst_31 : f32 to vector<8x32xf32>
    %91 = arith.cmpf oge, %89, %90 : vector<8x32xf32>
    %92 = vector.broadcast %0 : vector<1x32xf32> to vector<8x32xf32>
    %93 = arith.mulf %92, %89 : vector<8x32xf32>
    %94 = arith.select %91, %89, %93 : vector<8x32xi1>, vector<8x32xf32>
    %95 = vector.broadcast %85 : vector<8x1xf32> to vector<8x32xf32>
    %96 = arith.mulf %95, %94 : vector<8x32xf32>
    %97 = arith.addf %66, %96 : vector<8x32xf32>
    %98 = arith.mulf %97, %97 : vector<8x32xf32>
    %cst_32 = arith.constant dense<0.000000e+00> : vector<8xf32>
    %99 = vector.multi_reduction <add>, %98, %cst_32 [1] : vector<8x32xf32> to vector<8xf32>
    %100 = vector.shape_cast %99 : vector<8xf32> to vector<8x1xf32>
    %101 = math.sqrt %100 : vector<8x1xf32>
    %cst_33 = arith.constant 9.99999993E-9 : f32
    %102 = vector.broadcast %cst_33 : f32 to vector<8x1xf32>
    %103 = arith.addf %101, %102 : vector<8x1xf32>
    %104 = tpu.reciprocal %103 {approx = true} : vector<8x1xf32> -> vector<8x1xf32>
    %cst_34 = arith.constant 0.000000e+00 : f32
    %105 = vector.broadcast %cst_34 : f32 to vector<8x32xf32>
    %106 = arith.cmpf ogt, %97, %105 : vector<8x32xf32>
    %cst_35 = arith.constant 1.000000e+00 : f32
    %107 = vector.broadcast %cst_35 : f32 to vector<8x32xf32>
    %108 = arith.select %106, %97, %107 : vector<8x32xi1>, vector<8x32xf32>
    %109 = vector.broadcast %104 : vector<8x1xf32> to vector<8x32xf32>
    %110 = arith.mulf %108, %109 : vector<8x32xf32>
    %111 = vector.extract_strided_slice %7 {offsets = [4, 0], sizes = [2, 32], strides = [1, 1]} : vector<6x32xf32> to vector<2x32xf32>
    %112 = vector.extract_strided_slice %9 {offsets = [4, 0], sizes = [2, 32], strides = [1, 1]} : vector<6x32xf32> to vector<2x32xf32>
    %113 = vector.shape_cast %111 : vector<2x32xf32> to vector<2x1x32xf32>
    %114 = vector.shape_cast %113 : vector<2x1x32xf32> to vector<2x1x32xf32>
    %115 = vector.broadcast %114 : vector<2x1x32xf32> to vector<2x4x32xf32>
    %116 = vector.shape_cast %115 : vector<2x4x32xf32> to vector<8x32xf32>
    %117 = vector.shape_cast %112 : vector<2x32xf32> to vector<2x1x32xf32>
    %118 = vector.shape_cast %117 : vector<2x1x32xf32> to vector<2x1x32xf32>
    %119 = vector.broadcast %118 : vector<2x1x32xf32> to vector<2x4x32xf32>
    %120 = vector.shape_cast %119 : vector<2x4x32xf32> to vector<8x32xf32>
    %121 = arith.addf %110, %16 : vector<8x32xf32>
    %122 = arith.mulf %116, %121 : vector<8x32xf32>
    %cst_36 = arith.constant dense<0.000000e+00> : vector<8xf32>
    %123 = vector.multi_reduction <add>, %122, %cst_36 [1] : vector<8x32xf32> to vector<8xf32>
    %124 = vector.shape_cast %123 : vector<8xf32> to vector<8x1xf32>
    %125 = arith.negf %124 : vector<8x1xf32>
    %126 = math.exp %125 : vector<8x1xf32>
    %cst_37 = arith.constant 1.000000e+00 : f32
    %127 = vector.broadcast %cst_37 : f32 to vector<8x1xf32>
    %128 = arith.addf %127, %126 : vector<8x1xf32>
    %129 = arith.divf %127, %128 : vector<8x1xf32>
    %c0_38 = arith.constant 0 : index
    %c0_39 = arith.constant 0 : index
    %130 = vector.load %arg5[%c0_38, %c0_39] : memref<32x32xf32, #tpu.memory_space<vmem>>, vector<32x32xf32>
    %cst_40 = arith.constant dense<0.000000e+00> : vector<8x32xf32>
    %131 = tpu.matmul %110, %130, %cst_40 {dimension_numbers = #tpu.dot_dimension_numbers<[1], [0], [0], [1], [0, 0, 1, 1], [], []>} : vector<8x32xf32>, vector<32x32xf32>, vector<8x32xf32> -> vector<8x32xf32>
    %132 = arith.addf %131, %22 : vector<8x32xf32>
    %133 = arith.addf %132, %120 : vector<8x32xf32>
    %cst_41 = arith.constant 0.000000e+00 : f32
    %134 = vector.broadcast %cst_41 : f32 to vector<8x32xf32>
    %135 = arith.cmpf oge, %133, %134 : vector<8x32xf32>
    %136 = vector.broadcast %0 : vector<1x32xf32> to vector<8x32xf32>
    %137 = arith.mulf %136, %133 : vector<8x32xf32>
    %138 = arith.select %135, %133, %137 : vector<8x32xi1>, vector<8x32xf32>
    %139 = vector.broadcast %129 : vector<8x1xf32> to vector<8x32xf32>
    %140 = arith.mulf %139, %138 : vector<8x32xf32>
    %141 = arith.addf %110, %140 : vector<8x32xf32>
    %142 = arith.mulf %141, %141 : vector<8x32xf32>
    %cst_42 = arith.constant dense<0.000000e+00> : vector<8xf32>
    %143 = vector.multi_reduction <add>, %142, %cst_42 [1] : vector<8x32xf32> to vector<8xf32>
    %144 = vector.shape_cast %143 : vector<8xf32> to vector<8x1xf32>
    %145 = math.sqrt %144 : vector<8x1xf32>
    %cst_43 = arith.constant 9.99999993E-9 : f32
    %146 = vector.broadcast %cst_43 : f32 to vector<8x1xf32>
    %147 = arith.addf %145, %146 : vector<8x1xf32>
    %148 = tpu.reciprocal %147 {approx = true} : vector<8x1xf32> -> vector<8x1xf32>
    %cst_44 = arith.constant 0.000000e+00 : f32
    %149 = vector.broadcast %cst_44 : f32 to vector<8x32xf32>
    %150 = arith.cmpf ogt, %141, %149 : vector<8x32xf32>
    %cst_45 = arith.constant 1.000000e+00 : f32
    %151 = vector.broadcast %cst_45 : f32 to vector<8x32xf32>
    %152 = arith.select %150, %141, %151 : vector<8x32xi1>, vector<8x32xf32>
    %153 = vector.broadcast %148 : vector<8x1xf32> to vector<8x32xf32>
    %154 = arith.mulf %152, %153 : vector<8x32xf32>
    %c0_46 = arith.constant 0 : index
    %c0_47 = arith.constant 0 : index
    %c0_48 = arith.constant 0 : index
    %155 = vector.load %arg2[%c0_46, %c0_47, %c0_48] : memref<2x8x32xf32, #tpu.memory_space<vmem>>, vector<2x8x32xf32>
    %c0_49 = arith.constant 0 : index
    %c0_50 = arith.constant 0 : index
    %156 = vector.load %arg3[%c0_49, %c0_50] : memref<8x32xf32, #tpu.memory_space<vmem>>, vector<8x32xf32>
    %157 = vector.shape_cast %156 : vector<8x32xf32> to vector<1x8x32xf32>
    %158 = vector.broadcast %157 : vector<1x8x32xf32> to vector<2x8x32xf32>
    %159 = arith.mulf %155, %158 : vector<2x8x32xf32>
    %cst_51 = arith.constant dense<0.000000e+00> : vector<2x32xf32>
    %160 = vector.multi_reduction <add>, %159, %cst_51 [1] : vector<2x8x32xf32> to vector<2x32xf32>
    %161 = vector.shape_cast %154 : vector<8x32xf32> to vector<2x4x32xf32>
    %162 = vector.shape_cast %160 : vector<2x32xf32> to vector<2x1x32xf32>
    %163 = vector.broadcast %162 : vector<2x1x32xf32> to vector<2x4x32xf32>
    %164 = arith.mulf %161, %163 : vector<2x4x32xf32>
    %cst_52 = arith.constant dense<0.000000e+00> : vector<2x4xf32>
    %165 = vector.multi_reduction <add>, %164, %cst_52 [2] : vector<2x4x32xf32> to vector<2x4xf32>
    %cst_53 = arith.constant dense<0xFF800000> : vector<2xf32>
    %166 = vector.multi_reduction <maximumf>, %165, %cst_53 [1] : vector<2x4xf32> to vector<2xf32>
    %cst_54 = arith.constant 0xFF800000 : f32
    %167 = vector.broadcast %cst_54 : f32 to vector<2xf32>
    %168 = arith.maximumf %167, %166 : vector<2xf32>
    %169 = vector.shape_cast %168 : vector<2xf32> to vector<2x1xf32>
    %170 = vector.broadcast %169 : vector<2x1xf32> to vector<2x4xf32>
    %171 = arith.subf %165, %170 : vector<2x4xf32>
    %172 = math.exp %171 : vector<2x4xf32>
    %cst_55 = arith.constant dense<0.000000e+00> : vector<2xf32>
    %173 = vector.multi_reduction <add>, %172, %cst_55 [1] : vector<2x4xf32> to vector<2xf32>
    %174 = vector.shape_cast %173 : vector<2xf32> to vector<2x1xf32>
    %175 = vector.broadcast %174 : vector<2x1xf32> to vector<2x4xf32>
    %176 = arith.divf %172, %175 : vector<2x4xf32>
    %177 = vector.shape_cast %176 : vector<2x4xf32> to vector<2x4x1xf32>
    %178 = vector.broadcast %177 : vector<2x4x1xf32> to vector<2x4x32xf32>
    %179 = arith.mulf %161, %178 : vector<2x4x32xf32>
    %cst_56 = arith.constant dense<0.000000e+00> : vector<2x32xf32>
    %180 = vector.multi_reduction <add>, %179, %cst_56 [1] : vector<2x4x32xf32> to vector<2x32xf32>
    %c0_57 = arith.constant 0 : index
    %c0_58 = arith.constant 0 : index
    %181 = vector.load %arg8[%c0_57, %c0_58] : memref<32x32xf32, #tpu.memory_space<vmem>>, vector<32x32xf32>
    %cst_59 = arith.constant dense<0.000000e+00> : vector<2x32xf32>
    %182 = tpu.matmul %180, %181, %cst_59 {dimension_numbers = #tpu.dot_dimension_numbers<[1], [0], [0], [1], [0, 0, 1, 1], [], []>} : vector<2x32xf32>, vector<32x32xf32>, vector<2x32xf32> -> vector<2x32xf32>
    %183 = arith.addf %160, %182 : vector<2x32xf32>
    %cst_60 = arith.constant 0.000000e+00 : f32
    %184 = vector.broadcast %cst_60 : f32 to vector<2x32xf32>
    %185 = arith.cmpf oge, %183, %184 : vector<2x32xf32>
    %186 = vector.broadcast %0 : vector<1x32xf32> to vector<2x32xf32>
    %187 = arith.mulf %186, %183 : vector<2x32xf32>
    %188 = arith.select %185, %183, %187 : vector<2x32xi1>, vector<2x32xf32>
    %c0_61 = arith.constant 0 : index
    %c0_62 = arith.constant 0 : index
    %189 = vector.load %arg9[%c0_61, %c0_62] : memref<32x128xf32, #tpu.memory_space<vmem>>, vector<32x128xf32>
    %cst_63 = arith.constant dense<0.000000e+00> : vector<2x128xf32>
    %190 = tpu.matmul %188, %189, %cst_63 {dimension_numbers = #tpu.dot_dimension_numbers<[1], [0], [0], [1], [0, 0, 1, 1], [], []>} : vector<2x32xf32>, vector<32x128xf32>, vector<2x128xf32> -> vector<2x128xf32>
    %c0_64 = arith.constant 0 : index
    %c0_65 = arith.constant 0 : index
    %191 = vector.load %arg12[%c0_64, %c0_65] : memref<2x128xf32, #tpu.memory_space<vmem>>, vector<2x128xf32>
    tpu.vector_store %arg12[%c0_64, %c0_65], %190 {strides = array<i32>} : memref<2x128xf32, #tpu.memory_space<vmem>>, vector<2x128xf32>,
    return
  }
}

</mosaic_0001>

<bundles_post_ra>
// kernel: ren_forward.1
= control target key start
LH: loop header
LB: loop body
LE: loop exit
PB: predicated region body
PF: predicated region fallthrough
CT: control target
= control target key end

     0   :  { %v1350_v3 = vmov 0.0|0.0   ;;  %vm1351_vm0 = vmmov 0   ;;  %v1352_v9 = vmov 0.0   ;;  %vm57_vm1 = vcmask 261120   ;;  %s1695_s0 = inlined_call_operand.vmem [shape: f32[6,8,32], index: 0, kind: input, shape index: {}]   ;;  %s1696_s1 = inlined_call_operand.vmem [shape: f32[8,32], index: 1, kind: input, shape index: {}]   ;;  %s1697_s2 = inlined_call_operand.vmem [shape: f32[2,8,32], index: 2, kind: input, shape index: {}]   ;;  %s1698_s3 = inlined_call_operand.vmem [shape: f32[8,32], index: 3, kind: input, shape index: {}]   ;;  %s1699_s4 = inlined_call_operand.vmem [shape: f32[4,32], index: 4, kind: input, shape index: {}]   ;;  %s1700_s5 = inlined_call_operand.vmem [shape: f32[32,32], index: 5, kind: input, shape index: {}]   ;;  %s1701_s6 = inlined_call_operand.vmem [shape: f32[32,32], index: 6, kind: input, shape index: {}]   ;;  %s1702_s7 = inlined_call_operand.vmem [shape: f32[32,32], index: 7, kind: input, shape index: {}]   ;;  %s1703_s8 = inlined_call_operand.vmem [shape: f32[32,32], index: 8, kind: input, shape index: {}]   ;;  %s1704_s9 = inlined_call_operand.vmem [shape: f32[32,128], index: 9, kind: input, shape index: {}]   ;;  %s1705_s10 = inlined_call_operand.vmem [shape: f32[1,32], index: 10, kind: input, shape index: {}]   ;;  %s1706_s11 = inlined_call_operand.vmem [shape: f32[1,32], index: 11, kind: input, shape index: {}]   ;;  %s1707_s12 = inlined_call_operand.hbm [shape: f32[2,128], index: 12, kind: output, shape index: {}]  }
   0x1   :  { %v100_v0 = vld [vmem:[%s1702_s7] sm:$0xff]  ;;  %v101_v1 = vld [vmem:[%s1702_s7 + $0x8] sm:$0xff]  ;;  %v102_v2 = vld [vmem:[%s1702_s7 + $0x10] sm:$0xff]  ;;  %1241 = vmatprep.subr.bf16.mxu0 %v1350_v3  ;;  %1247 = vmatprep.subr.bf16.mxu1 %v1350_v3 }
   0x2   :  { %v1242_v4 = vpack.c.bf16 %v101_v1, %v100_v0  ;;  %v103_v5 = vld [vmem:[%s1702_s7 + $0x18] sm:$0xff]  ;;  %v193_v6 = vld [vmem:[%s1701_s6] sm:$0xff]  ;;  %v194_v7 = vld [vmem:[%s1701_s6 + $0x8] sm:$0xff]  ;;  %1172 = vmatprep.mubr.msk.f32.mxu0 %vm1351_vm0, %v1352_v9  ;;  %1183 = vmatprep.mubr.msk.f32.mxu1 %vm1351_vm0, %v1352_v9 }
   0x3   :  { %v1248_v8 = vpack.c.bf16 %v194_v7, %v193_v6  ;;  %v44_v10 = vld [vmem:[%s1695_s0] sm:$0xff]  ;;  %v45_v11 = vld [vmem:[%s1695_s0 + $0x8] sm:$0xff]  ;;  %v46_v12 = vld [vmem:[%s1695_s0 + $0x10] sm:$0xff]  ;;  %v1245_v13 = vpack.c.bf16 %v103_v5, %v102_v2 }
   0x4   :  { %1243 = vmatpush3.bf16.msra.mxu0 %v1242_v4  ;;  %v47_v14 = vld [vmem:[%s1695_s0 + $0x18] sm:$0xff]  ;;  %v48_v15 = vld [vmem:[%s1695_s0 + $0x20] sm:$0xff]  ;;  %v49_v16 = vld [vmem:[%s1695_s0 + $0x28] sm:$0xff] }
   0x5   :  { %1244 = vmatprep.subr.bf16.mxu0 %v1350_v3  ;;  %1249 = vmatpush3.bf16.msra.mxu1 %v1248_v8  ;;  %v50_v17 = vld [vmem:[%s1696_s1] sm:$0xff]  ;;  %v195_v18 = vld [vmem:[%s1701_s6 + $0x10] sm:$0xff]  ;;  %v196_v19 = vld [vmem:[%s1701_s6 + $0x18] sm:$0xff] }
   0x6   :  { %1250 = vmatprep.subr.bf16.mxu1 %v1350_v3  ;;  %v51_v20 = vmul.f32 %v50_v17, %v44_v10  ;;  %v52_v21 = vmul.f32 %v50_v17, %v45_v11  ;;  %v53_v22 = vmul.f32 %v50_v17, %v46_v12  ;;  %v54_v23 = vmul.f32 %v50_v17, %v47_v14  ;;  %v327_v27 = vld [vmem:[%s1700_s5] sm:$0xff]  ;;  %v328_v28 = vld [vmem:[%s1700_s5 + $0x8] sm:$0xff] }
   0x7   :  { %v55_v24 = vmul.f32 %v50_v17, %v48_v15  ;;  %v56_v25 = vmul.f32 %v50_v17, %v49_v16  ;;  %v1251_v26 = vpack.c.bf16 %v196_v19, %v195_v18 }
   0x8   :  { %17 = vsyncpa [#allocation3], 0  ;;  %1246 = vmatpush3.bf16.msra.mxu0 %v1245_v13  ;;  %v58_v29 = vsel %vm57_vm1, %v51_v20, 0.0  ;;  %v65_v30 = vsel %vm57_vm1, %v52_v21, 0.0  ;;  %v72_v31 = vsel %vm57_vm1, %v53_v22, 0.0  ;;  %v79_v32 = vsel %vm57_vm1, %v54_v23, 0.0 }
   0x9   :  { %1253 = vmatprep.subr.bf16.mxu0 %v1350_v3  ;;  %v59_v33 = vrot.slane %v58_v29, 4  ;;  %v66_v34 = vrot.slane %v65_v30, 4  ;;  %v73_v35 = vrot.slane %v72_v31, 4  ;;  %v80_v36 = vrot.slane %v79_v32, 4  ;;  %1252 = vmatpush3.bf16.msra.mxu1 %v1251_v26  ;;  %v1490_v37 = vld [vmem:[%s1699_s4] sm:$0xf] }
   0xa   :  { %v86_v38 = vsel %vm57_vm1, %v55_v24, 0.0  ;;  %v93_v39 = vsel %vm57_vm1, %v56_v25, 0.0  ;;  %v1494_v40 = vpack.c.bf16 %v328_v28, %v327_v27  ;;  %1259 = vmatprep.subr.bf16.mxu1 %v1350_v3  ;;  %v329_v45 = vld [vmem:[%s1700_s5 + $0x10] sm:$0xff]  ;;  %v330_v46 = vld [vmem:[%s1700_s5 + $0x18] sm:$0xff]  ;;  %v311_v62 = vadd.f32 %v1490_v37, %v1490_v37 }
   0xb   :  { %v60_v41 = vadd.f32 %v59_v33, %v58_v29  ;;  %v67_v42 = vadd.f32 %v66_v34, %v65_v30  ;;  %v74_v43 = vadd.f32 %v73_v35, %v72_v31  ;;  %v81_v44 = vadd.f32 %v80_v36, %v79_v32  ;;  %v1119_v34 = vld [vmem:[%s1705_s10] ss:$0 sm:$0xff] }
   0xc   :  { %v87_v47 = vrot.slane %v86_v38, 4  ;;  %v94_v48 = vrot.slane %v93_v39, 4  ;;  %1184 = vmatmul.mubr.msk.f32.vlgmr.msra.gmra.mrb[0].mxu1 %vm57_vm1, %v1490_v37  ;;  %v1257_v55 = vpack.c.bf16 %v330_v46, %v329_v45  ;;  %vm110_vm2 = vcmask 1041409  }
   0xd   :  { %v61_v49 = vrot.slane %v60_v41, 2  ;;  %v68_v50 = vrot.slane %v67_v42, 2  ;;  %v75_v51 = vrot.slane %v74_v43, 2  ;;  %v82_v52 = vrot.slane %v81_v44, 2  ;;  %1261 = vmatpush3.bf16.msra.mxu1 %v1494_v40  ;;  %1205 = vmatprep.mubr.msk.f32.mxu1 %vm1351_vm0, %v1352_v9 }
   0xe   :  { %v88_v53 = vadd.f32 %v87_v47, %v86_v38  ;;  %v95_v54 = vadd.f32 %v94_v48, %v93_v39  ;;  %1262 = vmatprep.subr.bf16.mxu1 %v1350_v3  ;;  %vm112_vm3 = vcmask 1042434   ;;  %vm114_vm4 = vcmask 1043459  }
   0xf   :  { %v62_v56 = vadd.f32 %v61_v49, %v60_v41  ;;  %v69_v57 = vadd.f32 %v68_v50, %v67_v42  ;;  %v76_v58 = vadd.f32 %v75_v51, %v74_v43  ;;  %v83_v59 = vadd.f32 %v82_v52, %v81_v44 }
  0x10   :  { %v89_v60 = vrot.slane %v88_v53, 2  ;;  %v96_v61 = vrot.slane %v95_v54, 2  ;;  %vm116_vm5 = vcmask 1044484   ;;  %vm118_vm6 = vcmask 1045509  }
  0x11   :  { %v63_v63 = vrot.slane %v62_v56, 1  ;;  %v70_v0 = vrot.slane %v69_v57, 1  ;;  %v77_v1 = vrot.slane %v76_v58, 1  ;;  %v84_v2 = vrot.slane %v83_v59, 1  ;;  %1264 = vmatpush3.bf16.msra.mxu1 %v1257_v55 }
  0x12   :  { %v90_v4 = vadd.f32 %v89_v60, %v88_v53  ;;  %v97_v5 = vadd.f32 %v96_v61, %v95_v54  ;;  %1271 = vmatprep.subr.bf16.mxu1 %v1350_v3  ;;  %v331_v24 = vcombine.low %v1490_v37, %v1490_v37  ;;  %v1353_v29 = vmov 1966171168  }
  0x13   :  { %v64_v6 = vadd.f32 %v63_v63, %v62_v56  ;;  %v71_v7 = vadd.f32 %v70_v0, %v69_v57  ;;  %v1512_v8 = vadd.f32 %v77_v1, %v76_v58  ;;  %v1514_v10 = vadd.f32 %v84_v2, %v83_v59 }
  0x14   :  { %v91_v11 = vrot.slane %v90_v4, 1  ;;  %v98_v12 = vrot.slane %v97_v5, 1  ;;  %v282_v30 = vunpack.c.l.s4 %v1353_v29  ;;  %v284_v31 = vlaneseq }
  0x15   :  { %v111_v13 = vsel %vm110_vm2, %v71_v7, %v64_v6  ;;  %v312_v14 = vmul.f32 %v311_v62, %v64_v6  ;;  %v313_v15 = vmul.f32 %v311_v62, %v71_v7  ;;  %v276_v38 = vcombine.high %v1119_v34, %v1119_v34 }
  0x16   :  { %v1517_v16 = vadd.f32 %v91_v11, %v90_v4  ;;  %v1519_v17 = vadd.f32 %v98_v12, %v97_v5  ;;  %v113_v18 = vsel %vm112_vm3, %v1512_v8, %v111_v13  ;;  %v283_v32 = vunpack.c.0.s8 %v282_v30  ;;  %v1566_v4 = vld [vmem:[%s1706_s11] ss:$0 sm:$0xff] }
  0x17   :  { %v115_v19 = vsel %vm114_vm4, %v1514_v10, %v113_v18  ;;  %v316_v20 = vcombine.low %v312_v14, %v313_v15  ;;  %v1541_v33 = vshrl.u32 %v284_v31, 7 }
  0x18   :  { %v117_v21 = vsel %vm116_vm5, %v1517_v16, %v115_v19 }
  0x19   :  { %v119_v22 = vsel %vm118_vm6, %v1519_v17, %v117_v21  ;;  %v318_v23 = vsel %vm57_vm1, %v316_v20, 0.0  ;;  %v286_v36 = vsub.s32 %v283_v32, %v1541_v33  ;;  %v1548_v46 = vsub.s32 0, %v1541_v33 }
  0x1a   :  { %1173 = vmatmul.mubr.msk.f32.vlgmr.msra.gmra.mrb[0].mxu0 %vm57_vm1, %v119_v22  ;;  %319 = vadd.xlane.f32.xlu0 %v318_v23  ;;  %v1354_v32 = vmov 839922192  }
  0x1b   :  { %1255 = vmatpush3.bf16.msra.mxu0 %v1494_v40  ;;  %1194 = vmatprep.mubr.msk.f32.mxu0 %vm1351_vm0, %v1352_v9 }
  0x1c   :  { %1256 = vmatprep.subr.bf16.mxu0 %v1350_v3 }
  0x1f   :  { %1258 = vmatpush3.bf16.msra.mxu0 %v1257_v55 }
  0x20   :  { %1265 = vmatprep.subr.bf16.mxu0 %v1350_v3 }
  0x22   :  { %1195 = vmatmul.mubr.msk.f32.vlgmr.msra.gmra.mrb[2].mxu0 %vm57_vm1, %v331_v24 }
  0x23   :  { %1267 = vmatpush3.bf16.msra.mxu0 %v1494_v40  ;;  %1216 = vmatprep.mubr.msk.f32.mxu0 %vm1351_vm0, %v1352_v9 }
  0x24   :  { %1268 = vmatprep.subr.bf16.mxu0 %v1350_v3 }
  0x27   :  { %1270 = vmatpush3.bf16.msra.mxu0 %v1257_v55 }
  0x28   :  { %1277 = vmatprep.subr.bf16.mxu0 %v1350_v3 }
  0xa7   :  { %v320_v25 = vpop.xlane.xlu0 %319 }
  0xa8   :  { %v1120_v26 = vmul.f32 -1.442695, %v320_v25 }
  0xaa   :  { %1294 = vpow2.f32 %v1120_v26 }
  0xb4   :  { %v1295_v35 = vpop.eup %1294 }
  0xb5   :  { %v324_v39 = vadd.f32 1.0, %v1295_v35  ;;  %v1355_v35 = vmov 1985246804  }
  0xb7   :  { %1296 = vrcp.f32 %v324_v39 }
  0xc1   :  { %v1297_v11 = vpop.eup %1296 }
  0xdf   :  { %v266_v27 = vpop.f32.mrb[0].mxu1 }
  0xe0   :  { %v1185_v28 = vpop.f32.mrb[1].mxu1  ;;  %v278_v44 = vadd.f32 %v1119_v34, %v266_v27  ;;  %v279_v45 = vadd.f32 %v276_v38, %v266_v27  ;;  %v450_v34 = vunpack.c.l.s4 %v1354_v32 }
  0xe2   :  { %v1550_v53 = vcombine.low %v278_v44, %v279_v45  ;;  %v451_v38 = vunpack.c.0.s8 %v450_v34 }
  0xed   :  { %v188_v40 = vpop.f32.mrb[0].mxu0 }
  0xee   :  { %v287_v41 = vrot.slane %v188_v40, %v286_v36  ;;  %v622_v42 = vcombine.high %v188_v40, %v188_v40  ;;  %v1174_v43 = vpop.f32.mrb[1].mxu0  ;;  %v1577_v40 = vsub.s32 %v451_v38, %v1541_v33 }
  0xf0   :  { %v288_v47 = vcombine.high %v287_v41, %v287_v41  ;;  %v295_v48 = vrot.slane %v287_v41, %v286_v36  ;;  %v629_v49 = vrot.slane %v622_v42, %v286_v36 }
  0xf2   :  { %v302_v50 = vrot.slane %v288_v47, %v286_v36  ;;  %v467_v51 = vcombine.high %v295_v48, %v295_v48  ;;  %v630_v52 = vcombine.high %v629_v49, %v629_v49  ;;  %v637_v54 = vrot.slane %v629_v49, %v286_v36 }
  0xf3   :  { %v306_v55 = vrot.slane %v295_v48, %v1548_v46 }
  0xf4   :  { %v468_v56 = vcombine.high %v302_v50, %v302_v50  ;;  %v644_v57 = vrot.slane %v630_v52, %v286_v36  ;;  %v310_v58 = vrot.slane %v302_v50, %v1548_v46  ;;  %v1555_v60 = vrot.slane %v467_v51, %v1548_v46 }
  0xf5   :  { %v404_v59 = vpop.f32.mrb[2].mxu0  ;;  %v648_v61 = vrot.slane %v637_v54, %v1548_v46  ;;  %v457_v36 = vunpack.c.l.s4 %v1355_v35 }
  0xf6   :  { %v405_v62 = vadd.f32 %v404_v59, %v1550_v53  ;;  %v408_v63 = vcombine.low %v306_v55, %v310_v58  ;;  %v1196_v0 = vpop.f32.mrb[3].mxu0  ;;  %v1560_v1 = vrot.slane %v468_v56, %v1548_v46  ;;  %v652_v2 = vrot.slane %v644_v57, %v1548_v46 }
  0xf7   :  { %v458_v39 = vunpack.c.0.s8 %v457_v36 }
  0xf8   :  { %v410_v5 = vadd.f32 %v408_v63, %v405_v62  ;;  %v569_v6 = vcombine.low %v1555_v60, %v1560_v1  ;;  %v1570_v7 = vcombine.low %v648_v61, %v652_v2 }
  0xf9   :  { %v1580_v41 = vsub.s32 %v458_v39, %v1541_v33 }
  0xfa   :  { %vm411_vm7 = vcmp.ge.f32.partialorder %v410_v5, 0.0  ;;  %v418_v12 = vmul.f32 %v1566_v4, %v410_v5 }
  0xfc   :  { %v419_v13 = vsel %vm411_vm7, %v410_v5, %v418_v12 }
  0xfd   :  { %v420_v14 = vmul.f32 %v1297_v11, %v419_v13 }
  0xff   :  { %v422_v15 = vcombine.high %v420_v14, %v420_v14  ;;  %v424_v18 = vadd.f32 %v420_v14, %v1490_v37 }
 0x101   :  { %v425_v19 = vadd.f32 %v422_v15, %v1490_v37  ;;  %v426_v20 = vmul.f32 %v424_v18, %v424_v18  ;;  %vm444_vm10 = vcmp.gt.f32.partialorder %v424_v18, 0.0 }
 0x102   :  { %v446_v45 = vsel %vm444_vm10, %v424_v18, 1.0 }
 0x103   :  { %v427_v21 = vmul.f32 %v425_v19, %v425_v19  ;;  %vm445_vm11 = vcmp.gt.f32.partialorder %v425_v19, 0.0 }
 0x104   :  { %v447_v47 = vsel %vm445_vm11, %v425_v19, 1.0 }
 0x105   :  { %v430_v22 = vcombine.low %v426_v20, %v427_v21 }
 0x107   :  { %v432_v23 = vsel %vm57_vm1, %v430_v22, 0.0 }
 0x108   :  { %433 = vadd.xlane.f32.xlu0 %v432_v23 }
 0x195   :  { %v434_v24 = vpop.xlane.xlu0 %433 }
 0x196   :  { %1298 = vrsqrt.f32 %v434_v24  ;;  %vm437_vm8 = vcmp.eq.f32.partialorder %v434_v24, inf  ;;  %v440_v27 = vand.u32 2147483648, %v434_v24  ;;  %vm439_vm9 = vcmp.eq.f32.partialorder %v434_v24, 0.0 }
 0x1a0   :  { %v1299_v25 = vpop.eup %1298 }
 0x1a1   :  { %v436_v26 = vmul.f32 %v1299_v25, %v434_v24 }
 0x1a3   :  { %v438_v28 = vsel %vm437_vm8, %v434_v24, %v436_v26  ;;  %vm819_vm8 = vcmask 257024  }
 0x1a4   :  { %v441_v29 = vsel %vm439_vm9, %v440_v27, %v438_v28  ;;  %vm840_vm9 = vcmask 25600  }
 0x1a5   :  { %v442_v30 = vadd.f32 1e-08, %v441_v29 }
 0x1a7   :  { %1300 = vrcp.f32 %v442_v30 }
 0x1b1   :  { %v1301_v42 = vpop.eup %1300 }
 0x1b2   :  { %v455_v43 = vrot.slane %v1301_v42, %v1577_v40  ;;  %v462_v44 = vrot.slane %v1301_v42, %v1580_v41 }
 0x1b4   :  { %v465_v48 = vmul.f32 %v455_v43, %v446_v45  ;;  %v466_v49 = vmul.f32 %v462_v44, %v447_v47 }
 0x1b6   :  { %v496_v50 = vcombine.low %v465_v48, %v466_v49  ;;  %v477_v51 = vadd.f32 %v465_v48, %v1490_v37  ;;  %v478_v52 = vadd.f32 %v466_v49, %v1490_v37 }
 0x1b8   :  { %1206 = vmatmul.mubr.msk.f32.vlgmr.msra.gmra.mrb[2].mxu1 %vm57_vm1, %v496_v50  ;;  %v479_v54 = vmul.f32 %v477_v51, %v1512_v8  ;;  %v480_v55 = vmul.f32 %v478_v52, %v1514_v10 }
 0x1b9   :  { %1227 = vmatprep.mubr.msk.f32.mxu1 %vm1351_vm0, %v1352_v9 }
 0x1ba   :  { %v483_v56 = vcombine.low %v479_v54, %v480_v55 }
 0x1bc   :  { %v485_v57 = vsel %vm57_vm1, %v483_v56, 0.0 }
 0x1bd   :  { %486 = vadd.xlane.f32.xlu1 %v485_v57 }
 0x24a   :  { %v487_v58 = vpop.xlane.xlu1 %486 }
 0x24b   :  { %v1123_v59 = vmul.f32 -1.442695, %v487_v58 }
 0x24d   :  { %1302 = vpow2.f32 %v1123_v59 }
 0x257   :  { %v1303_v60 = vpop.eup %1302 }
 0x258   :  { %v491_v61 = vadd.f32 1.0, %v1303_v60 }
 0x25a   :  { %1304 = vrcp.f32 %v491_v61 }
 0x264   :  { %v1305_v1 = vpop.eup %1304 }
 0x28b   :  { %v565_v62 = vpop.f32.mrb[2].mxu1 }
 0x28c   :  { %v566_v63 = vadd.f32 %v565_v62, %v1550_v53  ;;  %v1207_v0 = vpop.f32.mrb[3].mxu1  ;;  %v798_v62 = vld [vmem:[%s1697_s2] sm:$0xff] }
 0x28e   :  { %v571_v8 = vadd.f32 %v569_v6, %v566_v63 }
 0x290   :  { %vm572_vm12 = vcmp.ge.f32.partialorder %v571_v8, 0.0  ;;  %v573_v10 = vmul.f32 %v1566_v4, %v571_v8 }
 0x292   :  { %v574_v2 = vsel %vm572_vm12, %v571_v8, %v573_v10 }
 0x293   :  { %v575_v5 = vmul.f32 %v1305_v1, %v574_v2 }
 0x295   :  { %v577_v11 = vcombine.high %v575_v5, %v575_v5  ;;  %v579_v12 = vadd.f32 %v575_v5, %v465_v48 }
 0x297   :  { %v580_v13 = vadd.f32 %v577_v11, %v466_v49  ;;  %v581_v14 = vmul.f32 %v579_v12, %v579_v12  ;;  %vm599_vm15 = vcmp.gt.f32.partialorder %v579_v12, 0.0 }
 0x298   :  { %v601_v29 = vsel %vm599_vm15, %v579_v12, 1.0 }
 0x299   :  { %v582_v15 = vmul.f32 %v580_v13, %v580_v13  ;;  %vm600_vm3 = vcmp.gt.f32.partialorder %v580_v13, 0.0 }
 0x29a   :  { %v602_v30 = vsel %vm600_vm3, %v580_v13, 1.0 }
 0x29b   :  { %v585_v18 = vcombine.low %v581_v14, %v582_v15 }
 0x29d   :  { %v587_v19 = vsel %vm57_vm1, %v585_v18, 0.0 }
 0x29e   :  { %588 = vadd.xlane.f32.xlu1 %v587_v19 }
 0x32b   :  { %v589_v20 = vpop.xlane.xlu1 %588 }
 0x32c   :  { %1306 = vrsqrt.f32 %v589_v20  ;;  %vm592_vm13 = vcmp.eq.f32.partialorder %v589_v20, inf  ;;  %v595_v6 = vand.u32 2147483648, %v589_v20  ;;  %vm594_vm14 = vcmp.eq.f32.partialorder %v589_v20, 0.0 }
 0x336   :  { %v1307_v21 = vpop.eup %1306 }
 0x337   :  { %v591_v22 = vmul.f32 %v1307_v21, %v589_v20 }
 0x339   :  { %v593_v23 = vsel %vm592_vm13, %v589_v20, %v591_v22 }
 0x33a   :  { %v596_v24 = vsel %vm594_vm14, %v595_v6, %v593_v23 }
 0x33b   :  { %v597_v25 = vadd.f32 1e-08, %v596_v24 }
 0x33d   :  { %1308 = vrcp.f32 %v597_v25 }
 0x347   :  { %v1309_v26 = vpop.eup %1308 }
 0x348   :  { %v610_v27 = vrot.slane %v1309_v26, %v1577_v40  ;;  %v617_v28 = vrot.slane %v1309_v26, %v1580_v41 }
 0x34a   :  { %v620_v32 = vmul.f32 %v610_v27, %v601_v29  ;;  %v621_v34 = vmul.f32 %v617_v28, %v602_v30 }
 0x34c   :  { %v672_v35 = vcombine.low %v620_v32, %v621_v34  ;;  %v653_v36 = vadd.f32 %v620_v32, %v1490_v37  ;;  %v654_v38 = vadd.f32 %v621_v34, %v1490_v37 }
 0x34e   :  { %1217 = vmatmul.mubr.msk.f32.vlgmr.msra.gmra.mrb[4].mxu0 %vm57_vm1, %v672_v35  ;;  %v655_v39 = vmul.f32 %v653_v36, %v1517_v16  ;;  %v656_v42 = vmul.f32 %v654_v38, %v1519_v17 }
 0x34f   :  { %1238 = vmatprep.mubr.msk.f32.mxu0 %vm1351_vm0, %v1352_v9 }
 0x350   :  { %v659_v43 = vcombine.low %v655_v39, %v656_v42 }
 0x352   :  { %v661_v44 = vsel %vm57_vm1, %v659_v43, 0.0 }
 0x353   :  { %662 = vadd.xlane.f32.xlu0 %v661_v44 }
 0x3e0   :  { %v663_v45 = vpop.xlane.xlu0 %662 }
 0x3e1   :  { %v1125_v47 = vmul.f32 -1.442695, %v663_v45 }
 0x3e3   :  { %1310 = vpow2.f32 %v1125_v47 }
 0x3ed   :  { %v1311_v48 = vpop.eup %1310 }
 0x3ee   :  { %v667_v49 = vadd.f32 1.0, %v1311_v48 }
 0x3f0   :  { %1312 = vrcp.f32 %v667_v49 }
 0x3fa   :  { %v1313_v9 = vpop.eup %1312 }
 0x421   :  { %v741_v37 = vpop.f32.mrb[4].mxu0 }
 0x422   :  { %v742_v50 = vadd.f32 %v741_v37, %v1550_v53  ;;  %v1218_v51 = vpop.f32.mrb[5].mxu0  ;;  %v799_v53 = vld [vmem:[%s1697_s2 + $0x8] sm:$0xff] }
 0x423   :  { %v851_v51 = vsub.s32 1, %v1541_v33 }
 0x424   :  { %v747_v16 = vadd.f32 %v1570_v7, %v742_v50  ;;  %v800_v7 = vld [vmem:[%s1698_s3] sm:$0xff]  ;;  %v1356_v50 = vmov 0  }
 0x425   :  { %v802_v0 = vmul.f32 %v800_v7, %v799_v53  ;;  %v801_v8 = vmul.f32 %v800_v7, %v798_v62  ;;  %1292 = vset.pattern.permute.xlu0 %v1356_v50  ;;  %1291 = vset.pattern.permute.xlu1 %v1356_v50 }
 0x426   :  { %vm748_vm4 = vcmp.ge.f32.partialorder %v747_v16, 0.0  ;;  %v749_v17 = vmul.f32 %v1566_v4, %v747_v16 }
 0x427   :  { %v810_v10 = vsel %vm57_vm1, %v802_v0, 0.0  ;;  %v803_v1 = vsel %vm57_vm1, %v801_v8, 0.0 }
 0x428   :  { %v750_v52 = vsel %vm748_vm4, %v747_v16, %v749_v17  ;;  %v811_v2 = vrot.slane %v810_v10, 4  ;;  %v804_v5 = vrot.slane %v803_v1, 4 }
 0x429   :  { %v751_v54 = vmul.f32 %v1313_v9, %v750_v52 }
 0x42a   :  { %v812_v14 = vadd.f32 %v811_v2, %v810_v10  ;;  %v805_v15 = vadd.f32 %v804_v5, %v803_v1  ;;  %v923_v2 = vld [vmem:[%s1703_s8] sm:$0xff]  ;;  %v924_v5 = vld [vmem:[%s1703_s8 + $0x8] sm:$0xff] }
 0x42b   :  { %v753_v55 = vcombine.high %v751_v54, %v751_v54  ;;  %v755_v56 = vadd.f32 %v751_v54, %v620_v32 }
 0x42c   :  { %v813_v21 = vrot.slane %v812_v14, 2  ;;  %v806_v22 = vrot.slane %v805_v15, 2 }
 0x42d   :  { %v756_v57 = vadd.f32 %v753_v55, %v621_v34  ;;  %v757_v58 = vmul.f32 %v755_v56, %v755_v56  ;;  %vm775_vm7 = vcmp.gt.f32.partialorder %v755_v56, 0.0 }
 0x42e   :  { %v814_v6 = vadd.f32 %v813_v21, %v812_v14  ;;  %v807_v23 = vadd.f32 %v806_v22, %v805_v15  ;;  %v777_v34 = vsel %vm775_vm7, %v755_v56, 1.0 }
 0x42f   :  { %v758_v59 = vmul.f32 %v756_v57, %v756_v57  ;;  %vm776_vm6 = vcmp.gt.f32.partialorder %v756_v57, 0.0 }
 0x430   :  { %v815_v24 = vrot.slane %v814_v6, 1  ;;  %v808_v25 = vrot.slane %v807_v23, 1  ;;  %v778_v32 = vsel %vm776_vm6, %v756_v57, 1.0 }
 0x431   :  { %v761_v60 = vcombine.low %v757_v58, %v758_v59 }
 0x432   :  { %v1621_v28 = vadd.f32 %v815_v24, %v814_v6  ;;  %v1624_v30 = vadd.f32 %v808_v25, %v807_v23 }
 0x433   :  { %v763_v61 = vsel %vm57_vm1, %v761_v60, 0.0 }
 0x434   :  { %764 = vadd.xlane.f32.xlu1 %v763_v61 }
 0x4c1   :  { %v765_v63 = vpop.xlane.xlu1 %764 }
 0x4c2   :  { %1314 = vrsqrt.f32 %v765_v63  ;;  %vm768_vm0 = vcmp.eq.f32.partialorder %v765_v63, inf  ;;  %v771_v13 = vand.u32 2147483648, %v765_v63  ;;  %vm770_vm5 = vcmp.eq.f32.partialorder %v765_v63, 0.0 }
 0x4cc   :  { %v1315_v11 = vpop.eup %1314 }
 0x4cd   :  { %v767_v12 = vmul.f32 %v1315_v11, %v765_v63  ;;  %v1272_v11 = vpack.c.bf16 %v924_v5, %v923_v2 }
 0x4cf   :  { %v769_v18 = vsel %vm768_vm0, %v765_v63, %v767_v12  ;;  %1273 = vmatpush3.bf16.msra.mxu1 %v1272_v11  ;;  %v926_v12 = vld [vmem:[%s1703_s8 + $0x18] sm:$0xff] }
 0x4d0   :  { %v772_v19 = vsel %vm770_vm5, %v771_v13, %v769_v18  ;;  %1274 = vmatprep.subr.bf16.mxu1 %v1350_v3 }
 0x4d1   :  { %v773_v20 = vadd.f32 1e-08, %v772_v19 }
 0x4d3   :  { %1316 = vrcp.f32 %v773_v20 }
 0x4dd   :  { %v1317_v26 = vpop.eup %1316 }
 0x4de   :  { %v793_v27 = vrot.slane %v1317_v26, %v1580_v41  ;;  %v786_v29 = vrot.slane %v1317_v26, %v1577_v40  ;;  %v829_v40 = vand.u32 127, %v284_v31 }
 0x4e0   :  { %v1626_v35 = vmul.f32 %v793_v27, %v778_v32  ;;  %v1628_v36 = vmul.f32 %v786_v29, %v777_v34  ;;  %v832_v43 = vsub.s32 %v829_v40, %v1541_v33  ;;  %v1024_v40 = vld [vmem:[%s1704_s9 + $0x10] sm:$0xff] }
 0x4e2   :  { %v818_v38 = vmul.f32 %v1621_v28, %v1626_v35  ;;  %v817_v39 = vmul.f32 %v1624_v30, %v1628_v36 }
 0x4e4   :  { %v823_v41 = vsel %vm819_vm8, %v818_v38, 0.0  ;;  %v820_v42 = vsel %vm819_vm8, %v817_v39, 0.0 }
 0x4e5   :  { %824 = vadd.xlane.f32.xlu1 %v823_v41  ;;  %821 = vadd.xlane.f32.xlu0 %v820_v42  ;;  %v1023_v41 = vld [vmem:[%s1704_s9 + $0x8] sm:$0xff] }
 0x572   :  { %v825_v44 = vpop.xlane.xlu1 %824  ;;  %v822_v45 = vpop.xlane.xlu0 %821 }
 0x573   :  { %v837_v47 = vrot.slane %v825_v44, %v832_v43  ;;  %v833_v48 = vrot.slane %v822_v45, %v832_v43 }
 0x575   :  { %v838_v49 = vsel %vm110_vm2, %v837_v47, %v833_v48 }
 0x576   :  { %v841_v37 = vsel %vm840_vm9, %v838_v49, -inf }
 0x577   :  { %842 = vmax.xlane.f32.xlu0 %v841_v37 }
 0x604   :  { %v843_v16 = vpop.xlane.xlu0 %842 }
 0x605   :  { %v848_v31 = vrot.slane %v843_v16, %v1548_v46  ;;  %v852_v17 = vrot.slane %v843_v16, %v851_v51 }
 0x607   :  { %v855_v9 = vsub.f32 %v822_v45, %v848_v31  ;;  %v856_v52 = vsub.f32 %v825_v44, %v852_v17 }
 0x609   :  { %v857_v54 = vmul.f32 1.442695, %v855_v9  ;;  %v859_v55 = vmul.f32 1.442695, %v856_v52 }
 0x60b   :  { %1318 = vpow2.f32 %v857_v54 }
 0x60c   :  { %1320 = vpow2.f32 %v859_v55 }
 0x615   :  { %v1319_v56 = vpop.eup %1318 }
 0x616   :  { %v1321_v57 = vpop.eup %1320  ;;  %864 = vperm.xlu1 %1291, %v1319_v56  }
 0x617   :  { %867 = vperm.xlu0 %1292, %v1321_v57  }
 0x695   :  { %v865_v58 = vpop.permute.xlu1 %864 }
 0x696   :  { %v868_v59 = vpop.permute.xlu0 %867  ;;  %v872_v60 = vrot.slane %v865_v58, %v832_v43 }
 0x697   :  { %v876_v61 = vrot.slane %v868_v59, %v832_v43  ;;  %v1025_v43 = vld [vmem:[%s1704_s9 + $0x18] sm:$0xff] }
 0x698   :  { %v1281_v44 = vpack.c.bf16 %v1025_v43, %v1024_v40 }
 0x699   :  { %v877_v33 = vsel %vm110_vm2, %v876_v61, %v872_v60 }
 0x69a   :  { %v879_v53 = vsel %vm840_vm9, %v877_v33, 0.0 }
 0x69b   :  { %880 = vadd.xlane.f32.xlu1 %v879_v53 }
 0x728   :  { %v881_v7 = vpop.xlane.xlu1 %880 }
 0x729   :  { %v886_v62 = vrot.slane %v881_v7, %v1548_v46  ;;  %v890_v63 = vrot.slane %v881_v7, %v851_v51  ;;  %v925_v46 = vld [vmem:[%s1703_s8 + $0x10] sm:$0xff] }
 0x72a   :  { %v1275_v13 = vpack.c.bf16 %v926_v12, %v925_v46 }
 0x72b   :  { %1322 = vrcp.f32 %v886_v62 }
 0x72c   :  { %1324 = vrcp.f32 %v890_v63  ;;  %1276 = vmatpush3.bf16.msra.mxu1 %v1275_v13 }
 0x735   :  { %v1323_v0 = vpop.eup %1322 }
 0x736   :  { %v894_v8 = vmul.f32 %v1323_v0, %v1319_v56  ;;  %v1325_v10 = vpop.eup %1324 }
 0x737   :  { %v896_v1 = vmul.f32 %v1325_v10, %v1321_v57 }
 0x738   :  { %899 = vperm.xlu0 %1292, %v894_v8  }
 0x73c   :  { %904 = vperm.xlu0 %1292, %v896_v1  }
 0x7b7   :  { %v900_v14 = vpop.permute.xlu0 %899 }
 0x7b8   :  { %v907_v15 = vmul.f32 %v900_v14, %v1628_v36 }
 0x7ba   :  { %v909_v18 = vsel %vm819_vm8, %v907_v15, 0.0 }
 0x7bb   :  { %v910_v19 = vrot.slane %v909_v18, 4  ;;  %v905_v20 = vpop.permute.xlu0 %904 }
 0x7bc   :  { %v908_v21 = vmul.f32 %v905_v20, %v1626_v35  ;;  %v1022_v35 = vld [vmem:[%s1704_s9] sm:$0xff]  ;;  %s1357_s9 = smov [#allocation2]  }
 0x7bd   :  { %v911_v22 = vadd.f32 %v910_v19, %v909_v18  ;;  %v1278_v42 = vpack.c.bf16 %v1023_v41, %v1022_v35  ;;  %s1109_s7 = sshll.u32 %s1357_s9, 4  ;;  %s1110_s7 = int_to_ptr.vmem [resolvable:$true] %s1109_s7 }
 0x7be   :  { %v916_v6 = vsel %vm819_vm8, %v908_v21, 0.0  ;;  %s1326_s18 = scalar_lea.vmem %s1110_s7, 32  ;;  %p1331_p1 = scmp.lt.s32.totalorder %s1110_s7, %s1110_s7 }
 0x7bf   :  { %v912_v23 = vrot.slane %v911_v22, 2  ;;  %v917_v24 = vrot.slane %v916_v6, 4  ;;  %1279 = vmatpush3.bf16.msra.mxu0 %v1278_v42  ;;  %p1327_p0 = scmp.ne.s32.totalorder %s1110_s7, %s1326_s18  ;;  %p1332_p2 = scmp.lt.s32.totalorder %s1326_s18, %s1326_s18 }
 0x7c0   :  { %1280 = vmatprep.subr.bf16.mxu0 %v1350_v3 }
 0x7c1   :  { %v913_v25 = vadd.f32 %v912_v23, %v911_v22  ;;  %v918_v26 = vadd.f32 %v917_v24, %v916_v6  ;;  %p1333_p3 = por %p1332_p2, %p1331_p1 }
 0x7c3   :  { %v919_v27 = vrot.slane %v918_v26, 2  ;;  %v914_v29 = vrot.slane %v913_v25, 1  ;;  %1282 = vmatpush3.bf16.msra.mxu0 %v1281_v44  ;;  %p1334_p4 = pnand %p1333_p3, %p1327_p0 }
 0x7c5   :  { %v920_v32 = vadd.f32 %v919_v27, %v918_v26  ;;  %v915_v38 = vadd.f32 %v914_v29, %v913_v25 }
 0x7c7   :  { %v921_v34 = vrot.slane %v920_v32, 1 }
 0x7c9   :  { %v922_v39 = vadd.f32 %v921_v34, %v920_v32 }
 0x7cb   :  { %v929_v36 = vsel %vm110_vm2, %v922_v39, %v915_v38 }
 0x7cc   :  { %1228 = vmatmul.mubr.msk.f32.vlgmr.msra.gmra.mrb[4].mxu1 %vm57_vm1, %v929_v36 }
 0x89f   :  { %v998_v45 = vpop.f32.mrb[4].mxu1 }
 0x8a0   :  { %v1003_v47 = vrot.slane %v998_v45, 1  ;;  %v1229_v48 = vpop.f32.mrb[5].mxu1  ;;  %v1006_v37 = vadd.f32 %v998_v45, %v1624_v30 }
 0x8a2   :  { %v1007_v49 = vadd.f32 %v1003_v47, %v1621_v28  ;;  %vm1008_vm11 = vcmp.ge.f32.partialorder %v1006_v37, 0.0 }
 0x8a4   :  { %v1012_v50 = vrot.slane %v1007_v49, 7  ;;  %vm1009_vm10 = vcmp.ge.f32.partialorder %v1007_v49, 0.0 }
 0x8a6   :  { %v1013_v3 = vsel %vm110_vm2, %v1012_v50, %v1006_v37 }
 0x8a7   :  { %v1015_v51 = vmul.f32 %v1566_v4, %v1013_v3 }
 0x8a9   :  { %v1017_v16 = vrot.slane %v1015_v51, 1  ;;  %v1020_v9 = vsel %vm1008_vm11, %v1006_v37, %v1015_v51 }
 0x8ab   :  { %v1021_v31 = vsel %vm1009_vm10, %v1007_v49, %v1017_v16 }
 0x8ac   :  { %v1028_v17 = vrot.slane %v1021_v31, 7 }
 0x8ae   :  { %v1029_v52 = vsel %vm110_vm2, %v1028_v17, %v1020_v9 }
 0x8af   :  { %1239 = vmatmul.mubr.msk.f32.vlgmr.msra.gmra.mrb[6].mxu0 %vm57_vm1, %v1029_v52 }
 0x982   :  { %v1098_v28 = vpop.f32.mrb[6].mxu0 }
 0x983   :  { %1102 = vst [vmem:[#allocation2] sm:$0x3] %v1098_v28  ;;  %v1240_v30 = vpop.f32.mrb[7].mxu0 }
 0x984   :  { %1337 = shalt.err (!%p1334_p4)
}
 0x985   :  { %s1338_s5 = scalar_lea.hbm %s1707_s12, 32 }
 0x986   :  { %p1339_p5 = scmp.ne.s32.totalorder %s1707_s12, %s1338_s5  ;;  %p1342_p6 = scmp.lt.u32.totalorder %s1338_s5, %s1707_s12 }
 0x988   :  { %p1344_p7 = pnand %p1342_p6, %p1339_p5 }
 0x98a   :  { %1347 = shalt.err (!%p1344_p7)
}
 0x98b   :  { %1112 = dma.vmem_to_hbm [thread:$0]  %s1110_s7, 32, %s1707_s12, [#allocation3]  }
 0x98c   :  { %1348 = dma.done.wait [#allocation3], 32  }
 0x98d   :  { %1349 = vsyncadd [#allocation3], 4294967264 }
 0x98e   :  { %1116 = vsyncpa [#allocation3], 1 }

</bundles_post_ra>
